<compile_context>
chip_gen: v7x
topology: tpu7x:2x2x1
jax: 0.10.0
libtpu: 0.0.40
codegen_flags: <defaults>
</compile_context>

<pallas_src>
import functools

import jax
import jax.numpy as jnp
from jax.experimental import pallas as pl
from jax.experimental.pallas import tpu as pltpu


# ---------------------------------------------------------------------------
# Kernels
# ---------------------------------------------------------------------------
def _gap_simple_kernel(x_ref, o_ref, *, inv_hw):
    """Single-reduction-step path: full H*W row per tile, direct write."""
    s = jnp.sum(x_ref[...], axis=-1, keepdims=True, dtype=jnp.float32)
    o_ref[...] = (s * inv_hw).astype(o_ref.dtype)


def _gap_accum_kernel(x_ref, o_ref, acc_ref, *, inv_hw, tail, ragged):
    """Tiled-reduction path.

    x_ref:   (TILE_BC, TILE_HW) input tile in VMEM
    o_ref:   (TILE_BC, 1) output tile (same block across the HW grid axis)
    acc_ref: (TILE_BC, 1) f32 accumulator scratch
    tail:    number of valid lanes in the final HW tile (static)
    ragged:  whether the final HW tile is partial (static)
    """
    k = pl.program_id(1)
    last = pl.num_programs(1) - 1

    @pl.when(k == 0)
    def _init():
        acc_ref[...] = jnp.zeros_like(acc_ref)

    if ragged:
        # Only the final step pays for the mask; all other steps take the
        # plain lane-sum path.
        @pl.when(k != last)
        def _body():
            acc_ref[...] += jnp.sum(
                x_ref[...], axis=-1, keepdims=True, dtype=jnp.float32
            )

        @pl.when(k == last)
        def _tail_body():
            x = x_ref[...]
            col = jax.lax.broadcasted_iota(jnp.int32, x.shape, 1)
            x = jnp.where(col < tail, x, jnp.zeros_like(x))
            acc_ref[...] += jnp.sum(
                x, axis=-1, keepdims=True, dtype=jnp.float32
            )
    else:
        acc_ref[...] += jnp.sum(
            x_ref[...], axis=-1, keepdims=True, dtype=jnp.float32
        )

    @pl.when(k == last)
    def _finalize():
        o_ref[...] = (acc_ref[...] * inv_hw).astype(o_ref.dtype)


# ---------------------------------------------------------------------------
# Tiling / sizing helpers
# ---------------------------------------------------------------------------
def _round_up(n, m):
    return ((n + m - 1) // m) * m


def _chip_budget():
    """Per-chip (vmem_capacity, target_block_bytes, n_input_buffers)."""
    vmem_cap = 64 * 1024 * 1024  # conservative default (v7x-sized)
    try:
        info = pltpu.get_tpu_info()
        cap = getattr(info, "vmem_capacity_bytes", None)
        if cap:
            vmem_cap = int(cap)
    except Exception:
        pass

    if vmem_cap >= 96 * 1024 * 1024:
        # v5e / v6e: 128 MiB physical VMEM -> bigger tiles + 3-deep buffering.
        return vmem_cap, 12 * 1024 * 1024, 3
    # v7x: 64 MiB per TensorCore -> ~10 MiB tiles, default double buffering.
    return vmem_cap, 10 * 1024 * 1024, 2


def _choose_tiles(bc, hw, itemsize, target_block_bytes):
    """Pick (TILE_BC, TILE_HW) respecting the (8,128) layout grid, a per-buffer
    VMEM budget, a minimum strided-DMA burst, and >= 2 blocks on the bc axis
    when possible (megacore)."""
    # Sublane granularity: 8 rows for 32-bit, 16 for bf16, 32 for 8-bit.
    row_align = max(8, 32 // itemsize)

    # Minimum strided burst of ~512 B per row when the HW axis must be tiled.
    min_hw_tile = max(128, _round_up(512 // itemsize, 128))

    # Largest 128-multiple such that row_align rows fit the budget.
    max_hw_tile = (target_block_bytes // (row_align * itemsize) // 128) * 128
    max_hw_tile = max(min_hw_tile, max_hw_tile)

    if hw <= max_hw_tile:
        tile_hw = hw            # full row: lane-dense, contiguous DMA, 1 step
    else:
        tile_hw = max_hw_tile   # bounded per-buffer size for any H*W

    # BC tile: as many aligned rows as fit the budget, capped at the array.
    rows = max(row_align, target_block_bytes // (tile_hw * itemsize))
    rows = (rows // row_align) * row_align
    tile_bc = min(rows, _round_up(bc, row_align))

    # Guarantee >= 2 blocks on the "parallel" axis so both v7x TCs get work.
    if bc >= 2 * row_align:
        half = _round_up(-(-bc // 2), row_align)
        tile_bc = min(tile_bc, half)

    return tile_bc, tile_hw


def _maybe_buffered(block_shape, index_map, n_buffers, total_steps):
    if n_buffers > 2 and total_steps >= n_buffers + 1:
        return pl.BlockSpec(block_shape, index_map,
                            pipeline_mode=pl.Buffered(n_buffers))
    return pl.BlockSpec(block_shape, index_map)


# ---------------------------------------------------------------------------
# Wrapper
# ---------------------------------------------------------------------------
def channel_attention(x, *, target_block_bytes=None):
    """Forward pass of ChannelAttention: AdaptiveAvgPool2d(1) on NCHW input."""
    B, C, H, W = x.shape
    bc = B * C
    hw = H * W
    x2d = x.reshape(bc, hw)
    itemsize = jnp.dtype(x.dtype).itemsize

    vmem_cap, auto_block_bytes, n_buffers = _chip_budget()
    if target_block_bytes is None:
        target_block_bytes = auto_block_bytes

    tile_bc, tile_hw = _choose_tiles(bc, hw, itemsize, target_block_bytes)
    bc_steps = pl.cdiv(bc, tile_bc)
    hw_steps = pl.cdiv(hw, tile_hw)

    # VMEM limit derived from the actual buffer sizes + headroom, capped at
    # 3/4 of this chip's physical VMEM.
    block_bytes = tile_bc * tile_hw * itemsize
    small_bufs = 4 * tile_bc * (itemsize + 4)          # output + f32 acc
    vmem_limit = n_buffers * block_bytes + small_bufs + 4 * 1024 * 1024
    vmem_limit = max(16 * 1024 * 1024, min(vmem_limit, (vmem_cap * 3) // 4))

    inv_hw = float(1.0 / hw)

    if hw_steps == 1:
        # Full-row tiles: no accumulator, no pl.when phases, direct store.
        kernel = functools.partial(_gap_simple_kernel, inv_hw=inv_hw)
        out2d = pl.pallas_call(
            kernel,
            out_shape=jax.ShapeDtypeStruct((bc, 1), x.dtype),
            grid_spec=pltpu.PrefetchScalarGridSpec(
                num_scalar_prefetch=0,
                grid=(bc_steps,),
                in_specs=[_maybe_buffered((tile_bc, tile_hw),
                                          lambda i: (i, 0),
                                          n_buffers, bc_steps)],
                out_specs=pl.BlockSpec((tile_bc, 1), lambda i: (i, 0)),
            ),
            compiler_params=pltpu.CompilerParams(
                dimension_semantics=("parallel",),
                vmem_limit_bytes=vmem_limit,
            ),
        )(x2d)
    else:
        ragged = (hw % tile_hw) != 0
        tail = hw - (hw_steps - 1) * tile_hw
        kernel = functools.partial(_gap_accum_kernel, inv_hw=inv_hw,
                                   tail=tail, ragged=ragged)
        out2d = pl.pallas_call(
            kernel,
            out_shape=jax.ShapeDtypeStruct((bc, 1), x.dtype),
            grid_spec=pltpu.PrefetchScalarGridSpec(
                num_scalar_prefetch=0,
                grid=(bc_steps, hw_steps),
                in_specs=[_maybe_buffered((tile_bc, tile_hw),
                                          lambda i, k: (i, k),
                                          n_buffers, bc_steps * hw_steps)],
                out_specs=pl.BlockSpec((tile_bc, 1), lambda i, k: (i, 0)),
                scratch_shapes=[pltpu.VMEM((tile_bc, 1), jnp.float32)],
            ),
            compiler_params=pltpu.CompilerParams(
                dimension_semantics=("parallel", "arbitrary"),
                vmem_limit_bytes=vmem_limit,
            ),
        )(x2d)

    return out2d.reshape(B, C, 1, 1)


# ---------------------------------------------------------------------------
# Self-test
# ---------------------------------------------------------------------------
if __name__ == "__main__":
    key = jax.random.PRNGKey(0)

    # Check 1: small f32 input, full-row / single-step path (direct-write kernel).
    B, C, H, W = 2, 4, 16, 16
    x = jax.random.normal(key, (B, C, H, W), dtype=jnp.float32)
    out = jax.block_until_ready(channel_attention(x))
    ref = jnp.mean(x, axis=(2, 3), keepdims=True)
    assert out.shape == (B, C, 1, 1), out.shape
    assert jnp.allclose(out, ref, atol=1e-5, rtol=1e-5)

    # Check 2: force the tiled-reduction path with a ragged H*W tail
    # (hw=960, tile_hw=256 -> 4 reduction steps, last one masked) and >=2
    # blocks on the bc axis.
    B2, C2, H2, W2 = 2, 8, 24, 40
    x2 = jax.random.normal(jax.random.PRNGKey(0), (B2, C2, H2, W2),
                           dtype=jnp.float32)
    out2 = jax.block_until_ready(
        channel_attention(x2, target_block_bytes=8 * 1024)
    )
    ref2 = jnp.mean(x2, axis=(2, 3), keepdims=True)
    assert out2.shape == (B2, C2, 1, 1), out2.shape
    assert jnp.allclose(out2, ref2, atol=1e-5, rtol=1e-5)

    # Check 3: bf16 input with B*C (=12) not a multiple of the bf16 row
    # alignment (16) -> exercises masked partial-block input reads and
    # partial output stores.
    B3, C3, H3, W3 = 3, 4, 16, 16
    x3 = jax.random.normal(jax.random.PRNGKey(0), (B3, C3, H3, W3),
                           dtype=jnp.bfloat16)
    out3 = jax.block_until_ready(channel_attention(x3))
    ref3 = jnp.mean(x3.astype(jnp.float32), axis=(2, 3),
                    keepdims=True).astype(jnp.bfloat16)
    assert out3.shape == (B3, C3, 1, 1), out3.shape
    assert jnp.allclose(out3.astype(jnp.float32), ref3.astype(jnp.float32),
                        atol=1e-2, rtol=1e-2)

    print("KERNEL_OK")
</pallas_src>

<mosaic_0001>
module attributes {stable_mosaic.version = 11 : i64} {
  func.func @_gap_simple_kernel(%arg0: i32, %arg1: memref<8x256xf32, #tpu.memory_space<vmem>>, %arg2: memref<8x1xf32, #tpu.memory_space<vmem>>) attributes {dimension_semantics = [#tpu.dimension_semantics<parallel>], iteration_bounds = array<i64: 1>, scalar_prefetch = 0 : i64, scratch_operands = 0 : i64, tpu.core_type = #tpu.core_type<tc>, window_params = [{transform_indices = @transform_0, window_bounds = array<i64: 8, 256>}, {transform_indices = @transform_1, window_bounds = array<i64: 8, 1>}]} {
    %c0 = arith.constant 0 : index
    %c0_0 = arith.constant 0 : index
    %0 = vector.load %arg1[%c0, %c0_0] : memref<8x256xf32, #tpu.memory_space<vmem>>, vector<8x256xf32>
    %cst = arith.constant dense<0.000000e+00> : vector<8xf32>
    %1 = vector.multi_reduction <add>, %0, %cst [1] : vector<8x256xf32> to vector<8xf32>
    %2 = vector.shape_cast %1 : vector<8xf32> to vector<8x1xf32>
    %cst_1 = arith.constant 3.906250e-03 : f32
    %3 = vector.broadcast %cst_1 : f32 to vector<8x1xf32>
    %4 = arith.mulf %2, %3 : vector<8x1xf32>
    %c0_2 = arith.constant 0 : index
    %c0_3 = arith.constant 0 : index
    %5 = vector.load %arg2[%c0_2, %c0_3] : memref<8x1xf32, #tpu.memory_space<vmem>>, vector<8x1xf32>
    tpu.vector_store %arg2[%c0_2, %c0_3], %4 {strides = array<i32>} : memref<8x1xf32, #tpu.memory_space<vmem>>, vector<8x1xf32>,
    return
  }
  func.func @transform_0(%arg0: i32) -> (i32, i32) {
    %c0_i32 = arith.constant 0 : i32
    %c0_i32_0 = arith.constant 0 : i32
    return %arg0, %c0_i32 : i32, i32
  }
  func.func @transform_1(%arg0: i32) -> (i32, i32) {
    %c0_i32 = arith.constant 0 : i32
    %c0_i32_0 = arith.constant 0 : i32
    return %arg0, %c0_i32 : i32, i32
  }
}

</mosaic_0001>

<bundles_post_ra>
// kernel: tpu_custom_call.1
= control target key start
LH: loop header
LB: loop body
LE: loop exit
PB: predicated region body
PF: predicated region fallthrough
CT: control target
= control target key end

     0   :  { %6 = vsyncpa [#allocation3], 0  ;;  %s58_s6 = smov [#allocation2]   ;;  %s84_s0 = inlined_call_operand.hbm [shape: f32[8,256], index: 0, kind: input, shape index: {}]   ;;  %s85_s1 = inlined_call_operand.vmem [shape: f32[8,1], index: 1, kind: output, shape index: {}]  }
   0x1   :  { %s13_s7 = sshll.u32 %s58_s6, 4  ;;  %s34_s10 = scalar_lea.hbm %s84_s0, 256  ;;  %s14_s7 = int_to_ptr.vmem [resolvable:$true] %s13_s7 }
   0x2   :  { %p35_p0 = scmp.ne.s32.totalorder %s84_s0, %s34_s10  ;;  %p38_p1 = scmp.lt.u32.totalorder %s34_s10, %s84_s0 }
   0x4   :  { %p40_p2 = pnand %p38_p1, %p35_p0 }
   0x6   :  { %43 = shalt.err (!%p40_p2)
}
   0x7   :  { %s44_s15 = scalar_lea.vmem %s14_s7, 256  ;;  %p49_p4 = scmp.lt.s32.totalorder %s14_s7, %s14_s7 }
   0x8   :  { %p45_p3 = scmp.ne.s32.totalorder %s14_s7, %s44_s15  ;;  %p50_p5 = scmp.lt.s32.totalorder %s44_s15, %s44_s15 }
   0xa   :  { %p51_p6 = por %p50_p5, %p49_p4 }
   0xc   :  { %p52_p7 = pnand %p51_p6, %p45_p3 }
   0xe   :  { %55 = shalt.err (!%p52_p7)
}
   0xf   :  { %16 = dma.hbm_to_vmem [thread:$0]  %s84_s0, 256, %s14_s7, [#allocation3]  }
  0x10   :  { %56 = dma.done.wait [#allocation3], 256  }
  0x11   :  { %57 = vsyncadd [#allocation3], 4294967040  ;;  %v20_v0 = vld [vmem:[#allocation2] sm:$0xff]  ;;  %v21_v1 = vld [vmem:[#allocation2 + $0x8] sm:$0xff]  ;;  %vm26_vm0 = vcmask 7168  }
  0x12   :  { %v22_v2 = vadd.f32 %v21_v1, %v20_v0 }
  0x14   :  { %23 = vadd.xlane.f32.xlu0 %v22_v2 }
  0xa1   :  { %v24_v3 = vpop.xlane.xlu0 %23 }
  0xa2   :  { %v25_v4 = vmul.f32 0.00390625, %v24_v3 }
  0xa4   :  { %27 = vst.msk [vmem:[%s85_s1] sm:$0xff] %vm26_vm0, %v25_v4 }
  0xa5   :  { %32 = vsyncpa [#allocation3], 1 }

</bundles_post_ra>
